<compile_context>
chip_gen: v5e
topology: v5e:2x2
jax: 0.10.0
libtpu: 0.0.40
codegen_flags: <defaults>
</compile_context>

<pallas_src>
import jax
import jax.numpy as jnp
from jax.experimental import pallas as pl
from jax.experimental.pallas import tpu as pltpu


def _inverse_norm_kernel(x_ref, scale_ref, o_ref):
    # x_ref:     (TB, TL, TD) VMEM tile
    # scale_ref: (TB, 1,  TD) VMEM tile, broadcast over the TL (sequence) axis
    # o_ref:     (TB, TL, TD)
    o_ref[...] = (x_ref[...] * scale_ref[...]).astype(o_ref.dtype)


def _sublane_multiple(dtype):
    # Second-to-last block dim must be a multiple of the dtype's sublane packing
    # (8 for 32-bit, 16 for 16-bit, 32 for 8-bit) unless it equals the full dim.
    bits = jnp.dtype(dtype).itemsize * 8
    return max(8, 256 // bits)


def _device_defaults():
    """Returns (target bytes for one x-tile + out-tile, TensorCores per chip)."""
    kind = ""
    try:
        kind = jax.devices()[0].device_kind.lower()
    except Exception:
        pass
    if "v7" in kind:
        return 8 * 1024 * 1024, 2      # ~3.2 TB/s HBM: bigger tiles, 2 TCs/chip
    if "v5" in kind:
        return 3 * 1024 * 1024, 1      # ~0.8 TB/s HBM, 16 MiB scoped default
    return 4 * 1024 * 1024, 1          # v6e and friends


def _choose_tiles(B, L, D, bytes_per_elem, sub, target_bytes, min_steps):
    """Pick (TB, TL, TD) so one x-tile + out-tile is ~target_bytes and the grid
    has at least min_steps steps (megacore sharding + DMA/compute overlap)."""
    budget = max(1, target_bytes // bytes_per_elem)     # elements per tile

    # Lane-axis tiling only for pathologically large D; keep multiples of 128.
    TD = D
    if D > 128 and D * sub > budget:
        TD = max(128, min(D, (budget // sub) // 128 * 128))
    nd = pl.cdiv(D, TD)

    if L * TD <= budget:
        # Full L fits: keep TL = L (always layout-legal) and pack several batch
        # elements per step to amortize the ~0.35 us per-step overhead.
        TL = L
        TB = int(max(1, min(B, budget // max(1, L * TD))))
    else:
        # Large slab: tile the sequence axis in sublane-aligned chunks.
        TB = 1
        TL = int(max(sub, min(L, (budget // TD) // sub * sub)))

    def steps(tb, tl):
        return pl.cdiv(B, tb) * pl.cdiv(L, tl) * nd

    # Guarantee enough grid steps: shrink TB first, then split L.
    while steps(TB, TL) < min_steps:
        if TB > 1:
            TB = (TB + 1) // 2
        elif TL > sub:
            want_l = pl.cdiv(min_steps, pl.cdiv(B, TB) * nd)
            new_tl = max(sub, (pl.cdiv(L, want_l) // sub) * sub)
            if new_tl >= TL:
                new_tl = max(sub, ((TL // 2) // sub) * sub)
            if new_tl >= TL:
                break
            TL = new_tl
        else:
            break
    return TB, TL, TD


def ts_inverse_normalization(x, scale, method="mean", *,
                             out_dtype=None,
                             target_tile_bytes=None,
                             min_pallas_bytes=1024 * 1024):
    """Pallas implementation of TSInverseNormalization.forward.

    Args:
      x:      (B, L, D) array.
      scale:  (B, 1, D) array (the `normalizer.scale` attribute).
      method: 'mean' | 'last' | anything else (identity).
      out_dtype: optional override; default follows torch promotion
        (e.g. bf16 x with f32 scale -> f32). Pass x.dtype to halve writeback.
      target_tile_bytes: bytes budget for one x-tile + out-tile; default is
        generation-aware.
      min_pallas_bytes: below this many input bytes, use plain XLA multiply.
    """
    if method not in ("mean", "last"):
        return x  # identity path, no kernel needed

    B, L, D = x.shape
    assert scale.shape == (B, 1, D), f"scale shape {scale.shape} != {(B, 1, D)}"

    if out_dtype is None:
        out_dtype = jnp.result_type(x.dtype, scale.dtype)

    x_bytes = x.size * jnp.dtype(x.dtype).itemsize

    # Tiny inputs: custom-call launch + un-overlapped single-step pipeline
    # dominates; XLA's fused elementwise is strictly cheaper.
    if x_bytes < min_pallas_bytes:
        return (x * scale).astype(out_dtype)

    default_target, num_cores = _device_defaults()
    if target_tile_bytes is None:
        target_tile_bytes = default_target

    # Lane-dense repack: fold k = 128//D sequence steps into the lane axis so
    # stores are unmasked full-width vst (biggest single lever for small D).
    # x reshape is a free metadata change; scale tiling is tiny.
    orig_shape = (B, L, D)
    repacked = False
    if D < 128 and 128 % D == 0:
        k = 128 // D
        if k > 1 and L % k == 0:
            x = x.reshape(B, L // k, k * D)
            scale = jnp.tile(scale, (1, 1, k))
            L, D = L // k, k * D
            repacked = True
    # TODO(synk): when 128 % D != 0 a similar repack via lcm(D,128) is possible
    # if L is divisible; not needed for the common power-of-two hidden sizes.

    x_itemsize = jnp.dtype(x.dtype).itemsize
    s_itemsize = jnp.dtype(scale.dtype).itemsize
    o_itemsize = jnp.dtype(out_dtype).itemsize
    bytes_per_elem = x_itemsize + o_itemsize           # real per-element traffic
    sub = max(_sublane_multiple(x.dtype), _sublane_multiple(out_dtype))

    # Enough steps for both v7x TensorCores and for pipeline overlap, but only
    # when the tensor is big enough that splitting pays for itself.
    min_steps = max(2 * num_cores, 4) if x_bytes >= 2 * 1024 * 1024 else 1

    TB, TL, TD = _choose_tiles(B, L, D, bytes_per_elem, sub,
                               target_tile_bytes, min_steps)
    grid = (pl.cdiv(B, TB), pl.cdiv(L, TL), pl.cdiv(D, TD))

    # Explicit VMEM budget: double-buffered x/out tiles + resident scale tile.
    tile_elems = TB * TL * TD
    footprint = (2 * tile_elems * (x_itemsize + o_itemsize)
                 + 2 * TB * TD * s_itemsize)
    vmem_limit = int(max(footprint * 1.3, 20 * 1024 * 1024))

    # Advisory cost hint: pure mem-bound elementwise multiply.
    cost = pl.CostEstimate(
        flops=x.size, transcendentals=0,
        bytes_accessed=(x.size * x_itemsize + scale.size * s_itemsize
                        + x.size * o_itemsize))

    out = pl.pallas_call(
        _inverse_norm_kernel,
        out_shape=jax.ShapeDtypeStruct((B, L, D), out_dtype),
        grid_spec=pltpu.PrefetchScalarGridSpec(
            num_scalar_prefetch=0,
            grid=grid,
            in_specs=[
                pl.BlockSpec((TB, TL, TD), lambda b, l, d: (b, l, d)),
                # Scale block index does not move along the L axis, so the
                # pipeline keeps it resident instead of re-DMA'ing it per tile.
                pl.BlockSpec((TB, 1, TD), lambda b, l, d: (b, 0, d)),
            ],
            out_specs=pl.BlockSpec((TB, TL, TD), lambda b, l, d: (b, l, d)),
        ),
        compiler_params=pltpu.CompilerParams(
            dimension_semantics=("parallel", "parallel", "parallel"),
            vmem_limit_bytes=vmem_limit,
        ),
        cost_estimate=cost,
    )(x, scale)

    if repacked:
        out = out.reshape(orig_shape)
    return out


class _FakeNormalizer:
    """Minimal stand-in for TSNormalization: just holds a `scale` attribute."""

    def __init__(self, scale):
        self.scale = scale


class TSInverseNormalizationPallas:
    def __init__(self, method, normalizer):
        self.method = method
        self.normalizer = normalizer

    def __call__(self, x):
        if self.method == "mean" or self.method == "last":
            return ts_inverse_normalization(x, self.normalizer.scale, self.method)
        return x


if __name__ == "__main__":
    key = jax.random.PRNGKey(0)
    k1, k2, k3, k4 = jax.random.split(key, 4)

    # 1) Small module-typical shape: exercised via the small-size fallback.
    B, L, D = 2, 8, 32
    x = jax.random.normal(k1, (B, L, D), dtype=jnp.float32)
    x_prev = jax.random.normal(k2, (B, L, D), dtype=jnp.float32)
    scale = jnp.abs(x_prev).mean(axis=1, keepdims=True) + 1e-10  # (B, 1, D)
    module = TSInverseNormalizationPallas("mean", _FakeNormalizer(scale))
    out = jax.block_until_ready(module(x))
    ref = x * scale
    assert out.shape == ref.shape and out.dtype == ref.dtype
    assert jnp.allclose(out, ref, atol=1e-6, rtol=1e-6)

    # Identity path (method not in ('mean', 'last')).
    ident = TSInverseNormalizationPallas("none", _FakeNormalizer(scale))(x)
    assert jnp.array_equal(jax.block_until_ready(ident), x)

    # 2) Pallas path with lane-dense repack (D=64 folded to 128 lanes).
    B2, L2, D2 = 2, 4096, 64
    x2 = jax.random.normal(k3, (B2, L2, D2), dtype=jnp.float32)
    s2 = jnp.abs(jax.random.normal(k4, (B2, 1, D2), dtype=jnp.float32)) + 1e-3
    out2 = jax.block_until_ready(ts_inverse_normalization(x2, s2, "last"))
    assert jnp.allclose(out2, x2 * s2, atol=1e-6, rtol=1e-6)

    # 3) Mixed dtypes (bf16 x, f32 scale -> f32 out by torch promotion).
    B3, L3, D3 = 2, 2048, 256
    x3 = jax.random.normal(k1, (B3, L3, D3), dtype=jnp.bfloat16)
    s3 = jnp.abs(jax.random.normal(k2, (B3, 1, D3), dtype=jnp.float32)) + 1e-3
    out3 = jax.block_until_ready(ts_inverse_normalization(x3, s3, "mean"))
    ref3 = x3.astype(jnp.float32) * s3
    assert out3.dtype == ref3.dtype and out3.shape == ref3.shape
    assert jnp.allclose(out3, ref3, atol=1e-5, rtol=1e-5)

    # 3b) Opt-in bf16 output (halves writeback traffic; non-torch promotion).
    out3b = jax.block_until_ready(
        ts_inverse_normalization(x3, s3, "mean", out_dtype=jnp.bfloat16))
    assert out3b.dtype == jnp.bfloat16
    assert jnp.allclose(out3b.astype(jnp.float32), ref3, atol=2e-2, rtol=2e-2)

    # 4) Odd, non-divisible shape with masked lanes/sublanes (forced Pallas path).
    B4, L4, D4 = 3, 40, 48
    x4 = jax.random.normal(k3, (B4, L4, D4), dtype=jnp.float32)
    s4 = jnp.abs(jax.random.normal(k4, (B4, 1, D4), dtype=jnp.float32)) + 1e-3
    out4 = jax.block_until_ready(
        ts_inverse_normalization(x4, s4, "mean",
                                 target_tile_bytes=4 * 1024,
                                 min_pallas_bytes=0))
    assert jnp.allclose(out4, x4 * s4, atol=1e-6, rtol=1e-6)

    print("KERNEL_OK")
</pallas_src>

<mosaic_0001>
module attributes {stable_mosaic.version = 11 : i64} {
  func.func @_inverse_norm_kernel(%arg0: i32, %arg1: i32, %arg2: i32, %arg3: memref<1x1024x128xf32, #tpu.memory_space<vmem>>, %arg4: memref<1x1x128xf32, #tpu.memory_space<vmem>>, %arg5: memref<1x1024x128xf32, #tpu.memory_space<vmem>>) attributes {dimension_semantics = [#tpu.dimension_semantics<parallel>, #tpu.dimension_semantics<parallel>, #tpu.dimension_semantics<parallel>], iteration_bounds = array<i64: 2, 2, 1>, scalar_prefetch = 0 : i64, scratch_operands = 0 : i64, tpu.core_type = #tpu.core_type<tc>, window_params = [{transform_indices = @transform_0, window_bounds = array<i64: 1, 1024, 128>}, {transform_indices = @transform_1, window_bounds = array<i64: 1, 1, 128>}, {transform_indices = @transform_2, window_bounds = array<i64: 1, 1024, 128>}]} {
    %c0 = arith.constant 0 : index
    %c0_0 = arith.constant 0 : index
    %c0_1 = arith.constant 0 : index
    %0 = vector.load %arg3[%c0, %c0_0, %c0_1] : memref<1x1024x128xf32, #tpu.memory_space<vmem>>, vector<1x1024x128xf32>
    %c0_2 = arith.constant 0 : index
    %c0_3 = arith.constant 0 : index
    %c0_4 = arith.constant 0 : index
    %1 = vector.load %arg4[%c0_2, %c0_3, %c0_4] : memref<1x1x128xf32, #tpu.memory_space<vmem>>, vector<1x1x128xf32>
    %2 = vector.broadcast %1 : vector<1x1x128xf32> to vector<1x1024x128xf32>
    %3 = arith.mulf %0, %2 : vector<1x1024x128xf32>
    %c0_5 = arith.constant 0 : index
    %c0_6 = arith.constant 0 : index
    %c0_7 = arith.constant 0 : index
    %4 = vector.load %arg5[%c0_5, %c0_6, %c0_7] : memref<1x1024x128xf32, #tpu.memory_space<vmem>>, vector<1x1024x128xf32>
    tpu.vector_store %arg5[%c0_5, %c0_6, %c0_7], %3 {strides = array<i32>} : memref<1x1024x128xf32, #tpu.memory_space<vmem>>, vector<1x1024x128xf32>,
    return
  }
  func.func @transform_0(%arg0: i32, %arg1: i32, %arg2: i32) -> (i32, i32, i32) {
    %c0_i32 = arith.constant 0 : i32
    return %arg0, %arg1, %arg2 : i32, i32, i32
  }
  func.func @transform_1(%arg0: i32, %arg1: i32, %arg2: i32) -> (i32, i32, i32) {
    %c0_i32 = arith.constant 0 : i32
    %c0_i32_0 = arith.constant 0 : i32
    return %arg0, %c0_i32, %arg2 : i32, i32, i32
  }
  func.func @transform_2(%arg0: i32, %arg1: i32, %arg2: i32) -> (i32, i32, i32) {
    %c0_i32 = arith.constant 0 : i32
    return %arg0, %arg1, %arg2 : i32, i32, i32
  }
}

</mosaic_0001>

<bundles_post_ra>
// kernel: tpu_custom_call.1
= control target key start
LH: loop header
LB: loop body
LE: loop exit
PB: predicated region body
PF: predicated region fallthrough
CT: control target
= control target key end

     0   :  { %7 = vsyncpa [#allocation3], 0  ;;  %s1701_s0 = inlined_call_operand.hbm [shape: f32[2,2048,128], index: 0, kind: input, shape index: {}]   ;;  %s1702_s1 = inlined_call_operand.hbm [shape: f32[2,1,128], index: 1, kind: input, shape index: {}]   ;;  %s1703_s2 = inlined_call_operand.hbm [shape: f32[2,2048,128], index: 2, kind: output, shape index: {}]  }
   0x1   :  { %9 = vsyncpa [#allocation3 + $0x1], 0 }
   0x2   :  { %10 = vsyncpa [#allocation6], 0 }
   0x3   :  { %12 = vsyncpa [#allocation6 + $0x1], 0 }
   0x4   :  { %13 = vsyncpa [#allocation4], 0 }
   0x5   :  { %15 = vsyncpa [#allocation4 + $0x1], 0  ;;  %s1092_s9 = smov 0   ;;  %s1094_s10 = smov 0  }
   0x6   :  { %s1096_s11 = smov 0   ;;  %s1098_s12 = smov 0  }
   0x7   :  { %s1100_s13 = smov 0   ;;  %s1102_s14 = smov 0  }
   0x8   :  { %s1104_s15 = smov 0   ;;  %s1106_s16 = smov 0  }
   0x9   :  { %s1108_s17 = smov 0   ;;  %s1110_s18 = smov 0  }
   0xa   :  { %s1112_s19 = smov 0  }
   0xb LB: > { %s757_s20 = sadd.s32 4294967294, %s1071_s19   ;;  %s36_s21 = sadd.s32 1, %s1063_s17  ;;  %s1071_s19 = sphi %s1112_s19, %s21_s19   ;;  %s1067_s18 = sphi %s1110_s18, %s1727_s18   ;;  %s1063_s17 = sphi %s1108_s17, %s1726_s17   ;;  %s1059_s16 = sphi %s1106_s16, %s1725_s16   ;;  %s1055_s15 = sphi %s1104_s15, %s1724_s15   ;;  %s1051_s14 = sphi %s1102_s14, %s1723_s14   ;;  %s1047_s13 = sphi %s1100_s13, %s1722_s13   ;;  %s1043_s12 = sphi %s1098_s12, %s1721_s12   ;;  %s1039_s11 = sphi %s1096_s11, %s1720_s11   ;;  %s1035_s10 = sphi %s1094_s10, %s1719_s10   ;;  %s1031_s9 = sphi %s1092_s9, %s1718_s9  }
   0xc   : > { %p38_p0 = scmp.ge.s32.totalorder %s36_s21, 2  ;;  %s40_s22 = sadd.s32 1, %s1067_s18 }
   0xd   : > { %s51_s23 = sadd.s32 1, %s1051_s14  ;;  %p58_p1 = scmp.ne.s32.totalorder %s1051_s14, %s1047_s13 }
   0xe   : > { %s1729_s21 = smov (%p38_p0, %s36_s21), 0  ;;  %s1731_s22 = smov (!%p38_p0, %s40_s22), %s1067_s18 }
   0xf   : > { %1707 = sst [smem:[#allocation11_spill]] %s1729_s21  ;;  %s45_s24 = ssub.s32 %s1063_s17, %s1729_s21 }
  0x10   : > { %p59_p2 = scmp.eq.s32.totalorder %s1071_s19, 0  ;;  %p42_p3 = scmp.ge.s32.totalorder %s1731_s22, 2 }
  0x11   : > { %p64_p4 = scmp.ne.s32.totalorder %s1047_s13, %s1043_s12  ;;  %p126_p6 = scmp.eq.s32.totalorder %s757_s20, 3 }
  0x12   : > { %p1166_p5 = por %p59_p2, %p58_p1  ;;  %s1733_s22 = smov (%p42_p3, %s1731_s22), 0 }
  0x13   : > { %1709 = sst [smem:[#allocation12_spill]] %s1733_s22  ;;  %p1175_p7 = por %p126_p6, %p64_p4 }
  0x14   : > { %s1181_s27 = ssub.s32 %s1067_s18, %s1733_s22  ;;  %p1706_p8 = scmp.lt.s32.totalorder %s1071_s19, 4 }
  0x15   : > { %s46_s28 = sor.u32 %s45_s24, %s1181_s27  ;;  %s146_s29 = sand.u32 1, %s1051_s14  }
  0x16   : > { %p49_p9 = scmp.eq.s32.totalorder %s46_s28, 0  ;;  %s760_s30 = sshll.u32 %s146_s29, 10 }
  0x17   : > { %s761_s3 = sshll.u32 %s1063_s17, 7  ;;  %s762_s5 = sshll.u32 %s1067_s18, 8 }
  0x18   : > { %s1188_s4 = scalar_select %p49_p9, %s1051_s14, %s51_s23  }
  0x19   : > { %s156_s6 = sadd.s32 %s762_s5, %s761_s3  ;;  %s150_s7 = scalar_lea.vmem [#allocation2], %s760_s30 }
  0x1a   : > { %s161_s8 = sshll.u32 %s150_s7, 4  ;;  %s763_s20 = sshll.u32 %s156_s6, 3  ;;  %s162_s8 = int_to_ptr.vmem [resolvable:$true] %s161_s8 }
  0x1b   : > { %s158_s24 = scalar_lea.hbm %s1701_s0, %s763_s20  ;;  %p780_p10 = pnand %p1706_p8, %p1166_p5 }
  0x1c   : > { %s159_s23 = sshll.u32 %s158_s24, 4  ;;  %p764_p11 = scmp.ge.s32.totalorder %s1071_s19, 1  ;;  %s160_s23 = int_to_ptr.hbm [resolvable:$true] %s159_s23 }
  0x1d   : > { %s147_s28 = scalar_lea.sflag [#allocation3], %s146_s29  ;;  %s1073_s30 = smov 128  }
  0x1e   : > { %s1074_s3 = smov 8   ;;  %p187_p12 = scmp.lt.s32.totalorder %s1071_s19, 5 }
  0x1f   : > { %782 = dma.hbm_to_vmem [thread:$0]  (!%p780_p10), %s160_s23, 16384, %s162_s8, %s147_s28, %s1073_s30, %s1073_s30, %s1074_s3  }
  0x20   : > { %p1200_p13 = pnand %p764_p11, %p187_p12  ;;  %s756_s22 = sadd.s32 4294967295, %s1071_s19  }
  0x21   : > { %p77_p0 = scmp.eq.s32.totalorder %s1181_s27, 0  ;;  %p65_p3 = scmp.eq.s32.totalorder %s756_s22, 0 }
  0x22   : > { %s79_s25 = sadd.s32 1, %s1039_s11  ;;  %p86_p6 = scmp.ne.s32.totalorder %s1039_s11, %s1035_s10 }
  0x23   : > { %s1208_s5 = scalar_select %p77_p0, %s1039_s11, %s79_s25  }
  0x24   : > { %p1213_p5 = por %p65_p3, %p64_p4  ;;  %p92_p9 = scmp.ne.s32.totalorder %s1035_s10, %s1031_s9 }
  0x25   : > { %p120_p10 = scmp.eq.s32.totalorder %s756_s22, 3  ;;  %p88_p11 = por %p86_p6, %p59_p2 }
  0x26   : > { %s171_s6 = sand.u32 1, %s1039_s11   ;;  %p1224_p12 = por %p92_p9, %p65_p3 }
  0x27   : > { %p1231_p8 = por %p120_p10, %p58_p1  ;;  %s178_s24 = scalar_lea.hbm %s1702_s1, %s1067_s18 }
  0x28   : > { %s174_s23 = scalar_lea.vmem [#allocation5], %s171_s6  ;;  %s180_s9 = sshll.u32 %s178_s24, 4  ;;  %s181_s9 = int_to_ptr.hbm [resolvable:$true] %s180_s9 }
  0x29   : > { %s182_s28 = sshll.u32 %s174_s23, 4  ;;  %p1715_p2 = scmp.lt.s32.totalorder %s1071_s19, 4  ;;  %s183_s28 = int_to_ptr.vmem [resolvable:$true] %s182_s28 }
  0x2a   : > { %s172_s30 = scalar_lea.sflag [#allocation6], %s171_s6  ;;  %191 = sbr.rel (%p1200_p13) target bundleno = 186 (0xba), region = 28 }
  0x2b   : > { %p783_p4 = pnand %p1715_p2, %p88_p11  ;;  %s1244_s3 = sand.u32 (!%p1200_p13), 1, %s1047_s13  }
  0x2c   : > { %s765_s22 = sshll.u32 (!%p1200_p13), %s1244_s3, 10  ;;  %s194_s25 = scalar_lea.sflag (!%p1200_p13), [#allocation3], %s1244_s3 }
  0x2d   : > { %785 = dma.hbm_to_vmem [thread:$0]  (!%p783_p4), %s181_s9, 16, %s183_s28, %s172_s30  }
  0x2e   : > { %s1248_s8 = scalar_lea.vmem (!%p1200_p13), [#allocation2], %s765_s22 }
  0x2f   : > { %1018 = dma.done.wait (%p1213_p5), %s194_s25, 16384  }
  0x30   : > { %1020 = vsyncadd (%p1213_p5), %s194_s25, 4294950912  ;;  %s203_s6 = sand.u32 1, %s1035_s10  }
  0x31   : > { %s204_s21 = scalar_lea.sflag [#allocation6], %s203_s6  ;;  %s206_s20 = scalar_lea.vmem [#allocation5], %s203_s6 }
  0x32   : > { %1022 = dma.done.wait (%p1224_p12), %s204_s21, 16  }
  0x33   : > { %1024 = vsyncadd (%p1224_p12), %s204_s21, 4294967280  ;;  %v234_v0 = vld [vmem:[%s1248_s8] sm:$0xff]  ;;  %v235_v2 = vld [vmem:[%s1248_s8 + $0x8] sm:$0xff]  ;;  %s1272_s29 = scalar_lea.vmem [#allocation7], %s765_s22  ;;  %s768_s7 = sshll.u32 %s1055_s15, 7 }
  0x34   : > { %v1260_v1 = vld [vmem:[%s206_s20] ss:$0 sm:$0xff]  ;;  %v236_v3 = vld [vmem:[%s1248_s8 + $0x10] sm:$0xff]  ;;  %v237_v4 = vld [vmem:[%s1248_s8 + $0x18] sm:$0xff]  ;;  %s769_s24 = sshll.u32 %s1059_s16, 8  ;;  %s638_s30 = sshll.u32 %s1272_s29, 4  ;;  %s639_s30 = int_to_ptr.vmem [resolvable:$true] %s638_s30 }
  0x35   : > { %v366_v5 = vmul.f32 %v1260_v1, %v234_v0  ;;  %v367_v6 = vmul.f32 %v1260_v1, %v235_v2  ;;  %v368_v7 = vmul.f32 %v1260_v1, %v236_v3  ;;  %v238_v8 = vld [vmem:[%s1248_s8 + $0x20] sm:$0xff]  ;;  %v239_v9 = vld [vmem:[%s1248_s8 + $0x28] sm:$0xff]  ;;  %v369_v10 = vmul.f32 %v1260_v1, %v237_v4  ;;  %v240_v11 = vld [vmem:[%s1248_s8 + $0x30] sm:$0xff]  ;;  %s635_s15 = sadd.s32 %s769_s24, %s768_s7  ;;  %s623_s25 = scalar_lea.sflag [#allocation4], %s1244_s3 }
  0x36   : > { %v370_v12 = vmul.f32 %v1260_v1, %v238_v8  ;;  %v241_v13 = vld [vmem:[%s1248_s8 + $0x38] sm:$0xff]  ;;  %v371_v14 = vmul.f32 %v1260_v1, %v239_v9  ;;  %v242_v15 = vld [vmem:[%s1248_s8 + $0x40] sm:$0xff]  ;;  %v372_v16 = vmul.f32 %v1260_v1, %v240_v11  ;;  %v243_v17 = vld [vmem:[%s1248_s8 + $0x48] sm:$0xff]  ;;  %s770_s16 = sshll.u32 %s635_s15, 3  ;;  %s965_s7 = scalar_lea.hbm %s1703_s2, 4096 }
  0x37   : > { %494 = vst [vmem:[%s1272_s29] sm:$0xff] %v366_v5  ;;  %v373_v18 = vmul.f32 %v1260_v1, %v241_v13  ;;  %v244_v19 = vld [vmem:[%s1248_s8 + $0x50] sm:$0xff]  ;;  %v374_v20 = vmul.f32 %v1260_v1, %v242_v15  ;;  %v245_v21 = vld [vmem:[%s1248_s8 + $0x58] sm:$0xff]  ;;  %v375_v22 = vmul.f32 %v1260_v1, %v243_v17  ;;  %v246_v23 = vld [vmem:[%s1248_s8 + $0x60] sm:$0xff]  ;;  %s637_s9 = scalar_lea.hbm %s1703_s2, %s770_s16 }
  0x38   : > { %495 = vst [vmem:[%s1272_s29 + $0x8] sm:$0xff] %v367_v6  ;;  %v376_v24 = vmul.f32 %v1260_v1, %v244_v19  ;;  %v247_v25 = vld [vmem:[%s1248_s8 + $0x68] sm:$0xff]  ;;  %v377_v26 = vmul.f32 %v1260_v1, %v245_v21  ;;  %v248_v27 = vld [vmem:[%s1248_s8 + $0x70] sm:$0xff]  ;;  %v378_v28 = vmul.f32 %v1260_v1, %v246_v23  ;;  %v249_v29 = vld [vmem:[%s1248_s8 + $0x78] sm:$0xff]  ;;  %s640_s22 = sshll.u32 %s637_s9, 4  ;;  %s641_s22 = int_to_ptr.hbm [resolvable:$true] %s640_s22 }
  0x39   : > { %496 = vst [vmem:[%s1272_s29 + $0x10] sm:$0xff] %v368_v7  ;;  %v379_v30 = vmul.f32 %v1260_v1, %v247_v25  ;;  %v250_v31 = vld [vmem:[%s1248_s8 + $0x80] sm:$0xff]  ;;  %v380_v32 = vmul.f32 %v1260_v1, %v248_v27  ;;  %v251_v33 = vld [vmem:[%s1248_s8 + $0x88] sm:$0xff]  ;;  %v381_v34 = vmul.f32 %v1260_v1, %v249_v29  ;;  %v252_v35 = vld [vmem:[%s1248_s8 + $0x90] sm:$0xff] }
  0x3a   : > { %497 = vst [vmem:[%s1272_s29 + $0x18] sm:$0xff] %v369_v10  ;;  %v382_v36 = vmul.f32 %v1260_v1, %v250_v31  ;;  %v253_v37 = vld [vmem:[%s1248_s8 + $0x98] sm:$0xff]  ;;  %v383_v38 = vmul.f32 %v1260_v1, %v251_v33  ;;  %v254_v39 = vld [vmem:[%s1248_s8 + $0xa0] sm:$0xff]  ;;  %v384_v40 = vmul.f32 %v1260_v1, %v252_v35  ;;  %v255_v41 = vld [vmem:[%s1248_s8 + $0xa8] sm:$0xff] }
  0x3b   : > { %498 = vst [vmem:[%s1272_s29 + $0x20] sm:$0xff] %v370_v12  ;;  %v385_v42 = vmul.f32 %v1260_v1, %v253_v37  ;;  %v256_v43 = vld [vmem:[%s1248_s8 + $0xb0] sm:$0xff]  ;;  %v386_v44 = vmul.f32 %v1260_v1, %v254_v39  ;;  %v257_v45 = vld [vmem:[%s1248_s8 + $0xb8] sm:$0xff]  ;;  %v387_v46 = vmul.f32 %v1260_v1, %v255_v41  ;;  %v258_v47 = vld [vmem:[%s1248_s8 + $0xc0] sm:$0xff] }
  0x3c   : > { %499 = vst [vmem:[%s1272_s29 + $0x28] sm:$0xff] %v371_v14  ;;  %v388_v48 = vmul.f32 %v1260_v1, %v256_v43  ;;  %v259_v49 = vld [vmem:[%s1248_s8 + $0xc8] sm:$0xff]  ;;  %v389_v50 = vmul.f32 %v1260_v1, %v257_v45  ;;  %v260_v51 = vld [vmem:[%s1248_s8 + $0xd0] sm:$0xff]  ;;  %v390_v52 = vmul.f32 %v1260_v1, %v258_v47  ;;  %v261_v53 = vld [vmem:[%s1248_s8 + $0xd8] sm:$0xff] }
  0x3d   : > { %500 = vst [vmem:[%s1272_s29 + $0x30] sm:$0xff] %v372_v16  ;;  %v391_v54 = vmul.f32 %v1260_v1, %v259_v49  ;;  %v262_v55 = vld [vmem:[%s1248_s8 + $0xe0] sm:$0xff]  ;;  %v392_v56 = vmul.f32 %v1260_v1, %v260_v51  ;;  %v263_v57 = vld [vmem:[%s1248_s8 + $0xe8] sm:$0xff]  ;;  %v393_v58 = vmul.f32 %v1260_v1, %v261_v53  ;;  %v264_v59 = vld [vmem:[%s1248_s8 + $0xf0] sm:$0xff] }
  0x3e   : > { %501 = vst [vmem:[%s1272_s29 + $0x38] sm:$0xff] %v373_v18  ;;  %v394_v60 = vmul.f32 %v1260_v1, %v262_v55  ;;  %v265_v61 = vld [vmem:[%s1248_s8 + $0xf8] sm:$0xff]  ;;  %v395_v62 = vmul.f32 %v1260_v1, %v263_v57  ;;  %v266_v63 = vld [vmem:[%s1248_s8 + $0x100] sm:$0xff]  ;;  %v396_v0 = vmul.f32 %v1260_v1, %v264_v59  ;;  %v267_v2 = vld [vmem:[%s1248_s8 + $0x108] sm:$0xff] }
  0x3f   : > { %502 = vst [vmem:[%s1272_s29 + $0x40] sm:$0xff] %v374_v20  ;;  %v397_v3 = vmul.f32 %v1260_v1, %v265_v61  ;;  %v268_v4 = vld [vmem:[%s1248_s8 + $0x110] sm:$0xff]  ;;  %v398_v5 = vmul.f32 %v1260_v1, %v266_v63  ;;  %v269_v6 = vld [vmem:[%s1248_s8 + $0x118] sm:$0xff]  ;;  %v399_v7 = vmul.f32 %v1260_v1, %v267_v2  ;;  %v270_v8 = vld [vmem:[%s1248_s8 + $0x120] sm:$0xff] }
  0x40   : > { %503 = vst [vmem:[%s1272_s29 + $0x48] sm:$0xff] %v375_v22  ;;  %v400_v9 = vmul.f32 %v1260_v1, %v268_v4  ;;  %v271_v10 = vld [vmem:[%s1248_s8 + $0x128] sm:$0xff]  ;;  %v401_v11 = vmul.f32 %v1260_v1, %v269_v6  ;;  %v272_v12 = vld [vmem:[%s1248_s8 + $0x130] sm:$0xff]  ;;  %v402_v13 = vmul.f32 %v1260_v1, %v270_v8  ;;  %v273_v14 = vld [vmem:[%s1248_s8 + $0x138] sm:$0xff] }
  0x41   : > { %504 = vst [vmem:[%s1272_s29 + $0x50] sm:$0xff] %v376_v24  ;;  %v403_v15 = vmul.f32 %v1260_v1, %v271_v10  ;;  %v274_v16 = vld [vmem:[%s1248_s8 + $0x140] sm:$0xff]  ;;  %v404_v17 = vmul.f32 %v1260_v1, %v272_v12  ;;  %v275_v18 = vld [vmem:[%s1248_s8 + $0x148] sm:$0xff]  ;;  %v405_v19 = vmul.f32 %v1260_v1, %v273_v14  ;;  %v276_v20 = vld [vmem:[%s1248_s8 + $0x150] sm:$0xff] }
  0x42   : > { %505 = vst [vmem:[%s1272_s29 + $0x58] sm:$0xff] %v377_v26  ;;  %v406_v21 = vmul.f32 %v1260_v1, %v274_v16  ;;  %v277_v22 = vld [vmem:[%s1248_s8 + $0x158] sm:$0xff]  ;;  %v407_v23 = vmul.f32 %v1260_v1, %v275_v18  ;;  %v278_v24 = vld [vmem:[%s1248_s8 + $0x160] sm:$0xff]  ;;  %v408_v25 = vmul.f32 %v1260_v1, %v276_v20  ;;  %v279_v26 = vld [vmem:[%s1248_s8 + $0x168] sm:$0xff] }
  0x43   : > { %506 = vst [vmem:[%s1272_s29 + $0x60] sm:$0xff] %v378_v28  ;;  %v409_v27 = vmul.f32 %v1260_v1, %v277_v22  ;;  %v280_v28 = vld [vmem:[%s1248_s8 + $0x170] sm:$0xff]  ;;  %v410_v29 = vmul.f32 %v1260_v1, %v278_v24  ;;  %v411_v31 = vmul.f32 %v1260_v1, %v279_v26 }
  0x44   : > { %507 = vst [vmem:[%s1272_s29 + $0x68] sm:$0xff] %v379_v30  ;;  %v281_v30 = vld [vmem:[%s1248_s8 + $0x178] sm:$0xff]  ;;  %v412_v33 = vmul.f32 %v1260_v1, %v280_v28 }
  0x45   : > { %508 = vst [vmem:[%s1272_s29 + $0x70] sm:$0xff] %v380_v32  ;;  %v282_v32 = vld [vmem:[%s1248_s8 + $0x180] sm:$0xff]  ;;  %v413_v35 = vmul.f32 %v1260_v1, %v281_v30 }
  0x46   : > { %509 = vst [vmem:[%s1272_s29 + $0x78] sm:$0xff] %v381_v34  ;;  %v283_v34 = vld [vmem:[%s1248_s8 + $0x188] sm:$0xff]  ;;  %v414_v37 = vmul.f32 %v1260_v1, %v282_v32 }
  0x47   : > { %510 = vst [vmem:[%s1272_s29 + $0x80] sm:$0xff] %v382_v36  ;;  %v284_v36 = vld [vmem:[%s1248_s8 + $0x190] sm:$0xff]  ;;  %v415_v39 = vmul.f32 %v1260_v1, %v283_v34 }
  0x48   : > { %511 = vst [vmem:[%s1272_s29 + $0x88] sm:$0xff] %v383_v38  ;;  %v285_v38 = vld [vmem:[%s1248_s8 + $0x198] sm:$0xff]  ;;  %v416_v41 = vmul.f32 %v1260_v1, %v284_v36 }
  0x49   : > { %512 = vst [vmem:[%s1272_s29 + $0x90] sm:$0xff] %v384_v40  ;;  %v286_v40 = vld [vmem:[%s1248_s8 + $0x1a0] sm:$0xff]  ;;  %v417_v43 = vmul.f32 %v1260_v1, %v285_v38 }
  0x4a   : > { %513 = vst [vmem:[%s1272_s29 + $0x98] sm:$0xff] %v385_v42  ;;  %v287_v42 = vld [vmem:[%s1248_s8 + $0x1a8] sm:$0xff]  ;;  %v418_v45 = vmul.f32 %v1260_v1, %v286_v40 }
  0x4b   : > { %514 = vst [vmem:[%s1272_s29 + $0xa0] sm:$0xff] %v386_v44  ;;  %v288_v44 = vld [vmem:[%s1248_s8 + $0x1b0] sm:$0xff]  ;;  %v419_v47 = vmul.f32 %v1260_v1, %v287_v42 }
  0x4c   : > { %515 = vst [vmem:[%s1272_s29 + $0xa8] sm:$0xff] %v387_v46  ;;  %v289_v46 = vld [vmem:[%s1248_s8 + $0x1b8] sm:$0xff]  ;;  %v420_v49 = vmul.f32 %v1260_v1, %v288_v44 }
  0x4d   : > { %516 = vst [vmem:[%s1272_s29 + $0xb0] sm:$0xff] %v388_v48  ;;  %v290_v48 = vld [vmem:[%s1248_s8 + $0x1c0] sm:$0xff]  ;;  %v421_v51 = vmul.f32 %v1260_v1, %v289_v46 }
  0x4e   : > { %517 = vst [vmem:[%s1272_s29 + $0xb8] sm:$0xff] %v389_v50  ;;  %v291_v50 = vld [vmem:[%s1248_s8 + $0x1c8] sm:$0xff]  ;;  %v422_v53 = vmul.f32 %v1260_v1, %v290_v48 }
  0x4f   : > { %518 = vst [vmem:[%s1272_s29 + $0xc0] sm:$0xff] %v390_v52  ;;  %v292_v52 = vld [vmem:[%s1248_s8 + $0x1d0] sm:$0xff]  ;;  %v423_v55 = vmul.f32 %v1260_v1, %v291_v50 }
  0x50   : > { %519 = vst [vmem:[%s1272_s29 + $0xc8] sm:$0xff] %v391_v54  ;;  %v293_v54 = vld [vmem:[%s1248_s8 + $0x1d8] sm:$0xff]  ;;  %v424_v57 = vmul.f32 %v1260_v1, %v292_v52 }
  0x51   : > { %520 = vst [vmem:[%s1272_s29 + $0xd0] sm:$0xff] %v392_v56  ;;  %v294_v56 = vld [vmem:[%s1248_s8 + $0x1e0] sm:$0xff]  ;;  %v425_v59 = vmul.f32 %v1260_v1, %v293_v54 }
  0x52   : > { %521 = vst [vmem:[%s1272_s29 + $0xd8] sm:$0xff] %v393_v58  ;;  %v295_v58 = vld [vmem:[%s1248_s8 + $0x1e8] sm:$0xff]  ;;  %v426_v61 = vmul.f32 %v1260_v1, %v294_v56 }
  0x53   : > { %522 = vst [vmem:[%s1272_s29 + $0xe0] sm:$0xff] %v394_v60  ;;  %v296_v60 = vld [vmem:[%s1248_s8 + $0x1f0] sm:$0xff]  ;;  %v427_v63 = vmul.f32 %v1260_v1, %v295_v58 }
  0x54   : > { %523 = vst [vmem:[%s1272_s29 + $0xe8] sm:$0xff] %v395_v62  ;;  %v297_v62 = vld [vmem:[%s1248_s8 + $0x1f8] sm:$0xff]  ;;  %v428_v2 = vmul.f32 %v1260_v1, %v296_v60 }
  0x55   : > { %524 = vst [vmem:[%s1272_s29 + $0xf0] sm:$0xff] %v396_v0  ;;  %v298_v0 = vld [vmem:[%s1248_s8 + $0x200] sm:$0xff]  ;;  %v429_v4 = vmul.f32 %v1260_v1, %v297_v62 }
  0x56   : > { %525 = vst [vmem:[%s1272_s29 + $0xf8] sm:$0xff] %v397_v3  ;;  %v299_v3 = vld [vmem:[%s1248_s8 + $0x208] sm:$0xff]  ;;  %v430_v6 = vmul.f32 %v1260_v1, %v298_v0 }
  0x57   : > { %526 = vst [vmem:[%s1272_s29 + $0x100] sm:$0xff] %v398_v5  ;;  %v300_v5 = vld [vmem:[%s1248_s8 + $0x210] sm:$0xff]  ;;  %v431_v8 = vmul.f32 %v1260_v1, %v299_v3 }
  0x58   : > { %527 = vst [vmem:[%s1272_s29 + $0x108] sm:$0xff] %v399_v7  ;;  %v301_v7 = vld [vmem:[%s1248_s8 + $0x218] sm:$0xff]  ;;  %v432_v10 = vmul.f32 %v1260_v1, %v300_v5 }
  0x59   : > { %528 = vst [vmem:[%s1272_s29 + $0x110] sm:$0xff] %v400_v9  ;;  %v302_v9 = vld [vmem:[%s1248_s8 + $0x220] sm:$0xff]  ;;  %v433_v12 = vmul.f32 %v1260_v1, %v301_v7 }
  0x5a   : > { %529 = vst [vmem:[%s1272_s29 + $0x118] sm:$0xff] %v401_v11  ;;  %v303_v11 = vld [vmem:[%s1248_s8 + $0x228] sm:$0xff]  ;;  %v434_v14 = vmul.f32 %v1260_v1, %v302_v9 }
  0x5b   : > { %530 = vst [vmem:[%s1272_s29 + $0x120] sm:$0xff] %v402_v13  ;;  %v304_v13 = vld [vmem:[%s1248_s8 + $0x230] sm:$0xff]  ;;  %v435_v16 = vmul.f32 %v1260_v1, %v303_v11 }
  0x5c   : > { %531 = vst [vmem:[%s1272_s29 + $0x128] sm:$0xff] %v403_v15  ;;  %v305_v15 = vld [vmem:[%s1248_s8 + $0x238] sm:$0xff]  ;;  %v436_v18 = vmul.f32 %v1260_v1, %v304_v13 }
  0x5d   : > { %532 = vst [vmem:[%s1272_s29 + $0x130] sm:$0xff] %v404_v17  ;;  %v306_v17 = vld [vmem:[%s1248_s8 + $0x240] sm:$0xff]  ;;  %v437_v20 = vmul.f32 %v1260_v1, %v305_v15 }
  0x5e   : > { %533 = vst [vmem:[%s1272_s29 + $0x138] sm:$0xff] %v405_v19  ;;  %v307_v19 = vld [vmem:[%s1248_s8 + $0x248] sm:$0xff]  ;;  %v438_v22 = vmul.f32 %v1260_v1, %v306_v17 }
  0x5f   : > { %534 = vst [vmem:[%s1272_s29 + $0x140] sm:$0xff] %v406_v21  ;;  %v308_v21 = vld [vmem:[%s1248_s8 + $0x250] sm:$0xff]  ;;  %v439_v24 = vmul.f32 %v1260_v1, %v307_v19 }
  0x60   : > { %535 = vst [vmem:[%s1272_s29 + $0x148] sm:$0xff] %v407_v23  ;;  %v309_v23 = vld [vmem:[%s1248_s8 + $0x258] sm:$0xff]  ;;  %v440_v26 = vmul.f32 %v1260_v1, %v308_v21 }
  0x61   : > { %536 = vst [vmem:[%s1272_s29 + $0x150] sm:$0xff] %v408_v25  ;;  %v310_v25 = vld [vmem:[%s1248_s8 + $0x260] sm:$0xff]  ;;  %v441_v28 = vmul.f32 %v1260_v1, %v309_v23 }
  0x62   : > { %537 = vst [vmem:[%s1272_s29 + $0x158] sm:$0xff] %v409_v27  ;;  %v311_v27 = vld [vmem:[%s1248_s8 + $0x268] sm:$0xff]  ;;  %v442_v30 = vmul.f32 %v1260_v1, %v310_v25 }
  0x63   : > { %538 = vst [vmem:[%s1272_s29 + $0x160] sm:$0xff] %v410_v29  ;;  %v312_v29 = vld [vmem:[%s1248_s8 + $0x270] sm:$0xff]  ;;  %v443_v32 = vmul.f32 %v1260_v1, %v311_v27 }
  0x64   : > { %539 = vst [vmem:[%s1272_s29 + $0x168] sm:$0xff] %v411_v31  ;;  %v313_v31 = vld [vmem:[%s1248_s8 + $0x278] sm:$0xff]  ;;  %v444_v34 = vmul.f32 %v1260_v1, %v312_v29 }
  0x65   : > { %540 = vst [vmem:[%s1272_s29 + $0x170] sm:$0xff] %v412_v33  ;;  %v314_v33 = vld [vmem:[%s1248_s8 + $0x280] sm:$0xff]  ;;  %v445_v36 = vmul.f32 %v1260_v1, %v313_v31 }
  0x66   : > { %541 = vst [vmem:[%s1272_s29 + $0x178] sm:$0xff] %v413_v35  ;;  %v315_v35 = vld [vmem:[%s1248_s8 + $0x288] sm:$0xff]  ;;  %v446_v38 = vmul.f32 %v1260_v1, %v314_v33 }
  0x67   : > { %542 = vst [vmem:[%s1272_s29 + $0x180] sm:$0xff] %v414_v37  ;;  %v316_v37 = vld [vmem:[%s1248_s8 + $0x290] sm:$0xff]  ;;  %v447_v40 = vmul.f32 %v1260_v1, %v315_v35 }
  0x68   : > { %543 = vst [vmem:[%s1272_s29 + $0x188] sm:$0xff] %v415_v39  ;;  %v317_v39 = vld [vmem:[%s1248_s8 + $0x298] sm:$0xff]  ;;  %v448_v42 = vmul.f32 %v1260_v1, %v316_v37 }
  0x69   : > { %544 = vst [vmem:[%s1272_s29 + $0x190] sm:$0xff] %v416_v41  ;;  %v318_v41 = vld [vmem:[%s1248_s8 + $0x2a0] sm:$0xff]  ;;  %v449_v44 = vmul.f32 %v1260_v1, %v317_v39 }
  0x6a   : > { %545 = vst [vmem:[%s1272_s29 + $0x198] sm:$0xff] %v417_v43  ;;  %v319_v43 = vld [vmem:[%s1248_s8 + $0x2a8] sm:$0xff]  ;;  %v450_v46 = vmul.f32 %v1260_v1, %v318_v41 }
  0x6b   : > { %546 = vst [vmem:[%s1272_s29 + $0x1a0] sm:$0xff] %v418_v45  ;;  %v320_v45 = vld [vmem:[%s1248_s8 + $0x2b0] sm:$0xff]  ;;  %v451_v48 = vmul.f32 %v1260_v1, %v319_v43 }
  0x6c   : > { %547 = vst [vmem:[%s1272_s29 + $0x1a8] sm:$0xff] %v419_v47  ;;  %v321_v47 = vld [vmem:[%s1248_s8 + $0x2b8] sm:$0xff]  ;;  %v452_v50 = vmul.f32 %v1260_v1, %v320_v45 }
  0x6d   : > { %548 = vst [vmem:[%s1272_s29 + $0x1b0] sm:$0xff] %v420_v49  ;;  %v322_v49 = vld [vmem:[%s1248_s8 + $0x2c0] sm:$0xff]  ;;  %v453_v52 = vmul.f32 %v1260_v1, %v321_v47 }
  0x6e   : > { %549 = vst [vmem:[%s1272_s29 + $0x1b8] sm:$0xff] %v421_v51  ;;  %v323_v51 = vld [vmem:[%s1248_s8 + $0x2c8] sm:$0xff]  ;;  %v454_v54 = vmul.f32 %v1260_v1, %v322_v49 }
  0x6f   : > { %550 = vst [vmem:[%s1272_s29 + $0x1c0] sm:$0xff] %v422_v53  ;;  %v324_v53 = vld [vmem:[%s1248_s8 + $0x2d0] sm:$0xff]  ;;  %v455_v56 = vmul.f32 %v1260_v1, %v323_v51 }
  0x70   : > { %551 = vst [vmem:[%s1272_s29 + $0x1c8] sm:$0xff] %v423_v55  ;;  %v325_v55 = vld [vmem:[%s1248_s8 + $0x2d8] sm:$0xff]  ;;  %v456_v58 = vmul.f32 %v1260_v1, %v324_v53 }
  0x71   : > { %552 = vst [vmem:[%s1272_s29 + $0x1d0] sm:$0xff] %v424_v57  ;;  %v326_v57 = vld [vmem:[%s1248_s8 + $0x2e0] sm:$0xff]  ;;  %v457_v60 = vmul.f32 %v1260_v1, %v325_v55 }
  0x72   : > { %553 = vst [vmem:[%s1272_s29 + $0x1d8] sm:$0xff] %v425_v59  ;;  %v327_v59 = vld [vmem:[%s1248_s8 + $0x2e8] sm:$0xff]  ;;  %v458_v62 = vmul.f32 %v1260_v1, %v326_v57 }
  0x73   : > { %554 = vst [vmem:[%s1272_s29 + $0x1e0] sm:$0xff] %v426_v61  ;;  %v328_v61 = vld [vmem:[%s1248_s8 + $0x2f0] sm:$0xff]  ;;  %v459_v0 = vmul.f32 %v1260_v1, %v327_v59 }
  0x74   : > { %555 = vst [vmem:[%s1272_s29 + $0x1e8] sm:$0xff] %v427_v63  ;;  %v329_v63 = vld [vmem:[%s1248_s8 + $0x2f8] sm:$0xff]  ;;  %v460_v3 = vmul.f32 %v1260_v1, %v328_v61 }
  0x75   : > { %556 = vst [vmem:[%s1272_s29 + $0x1f0] sm:$0xff] %v428_v2  ;;  %v330_v2 = vld [vmem:[%s1248_s8 + $0x300] sm:$0xff]  ;;  %v461_v5 = vmul.f32 %v1260_v1, %v329_v63 }
  0x76   : > { %557 = vst [vmem:[%s1272_s29 + $0x1f8] sm:$0xff] %v429_v4  ;;  %v331_v4 = vld [vmem:[%s1248_s8 + $0x308] sm:$0xff]  ;;  %v462_v7 = vmul.f32 %v1260_v1, %v330_v2 }
  0x77   : > { %558 = vst [vmem:[%s1272_s29 + $0x200] sm:$0xff] %v430_v6  ;;  %v332_v6 = vld [vmem:[%s1248_s8 + $0x310] sm:$0xff]  ;;  %v463_v9 = vmul.f32 %v1260_v1, %v331_v4 }
  0x78   : > { %559 = vst [vmem:[%s1272_s29 + $0x208] sm:$0xff] %v431_v8  ;;  %v333_v8 = vld [vmem:[%s1248_s8 + $0x318] sm:$0xff]  ;;  %v464_v11 = vmul.f32 %v1260_v1, %v332_v6 }
  0x79   : > { %560 = vst [vmem:[%s1272_s29 + $0x210] sm:$0xff] %v432_v10  ;;  %v334_v10 = vld [vmem:[%s1248_s8 + $0x320] sm:$0xff]  ;;  %v465_v13 = vmul.f32 %v1260_v1, %v333_v8 }
  0x7a   : > { %561 = vst [vmem:[%s1272_s29 + $0x218] sm:$0xff] %v433_v12  ;;  %v335_v12 = vld [vmem:[%s1248_s8 + $0x328] sm:$0xff]  ;;  %v466_v15 = vmul.f32 %v1260_v1, %v334_v10 }
  0x7b   : > { %562 = vst [vmem:[%s1272_s29 + $0x220] sm:$0xff] %v434_v14  ;;  %v336_v14 = vld [vmem:[%s1248_s8 + $0x330] sm:$0xff]  ;;  %v467_v17 = vmul.f32 %v1260_v1, %v335_v12 }
  0x7c   : > { %563 = vst [vmem:[%s1272_s29 + $0x228] sm:$0xff] %v435_v16  ;;  %v337_v16 = vld [vmem:[%s1248_s8 + $0x338] sm:$0xff]  ;;  %v468_v19 = vmul.f32 %v1260_v1, %v336_v14 }
  0x7d   : > { %564 = vst [vmem:[%s1272_s29 + $0x230] sm:$0xff] %v436_v18  ;;  %v338_v18 = vld [vmem:[%s1248_s8 + $0x340] sm:$0xff]  ;;  %v469_v21 = vmul.f32 %v1260_v1, %v337_v16 }
  0x7e   : > { %565 = vst [vmem:[%s1272_s29 + $0x238] sm:$0xff] %v437_v20  ;;  %v339_v20 = vld [vmem:[%s1248_s8 + $0x348] sm:$0xff]  ;;  %v470_v23 = vmul.f32 %v1260_v1, %v338_v18 }
  0x7f   : > { %566 = vst [vmem:[%s1272_s29 + $0x240] sm:$0xff] %v438_v22  ;;  %v340_v22 = vld [vmem:[%s1248_s8 + $0x350] sm:$0xff]  ;;  %v471_v25 = vmul.f32 %v1260_v1, %v339_v20 }
  0x80   : > { %567 = vst [vmem:[%s1272_s29 + $0x248] sm:$0xff] %v439_v24  ;;  %v341_v24 = vld [vmem:[%s1248_s8 + $0x358] sm:$0xff]  ;;  %v472_v27 = vmul.f32 %v1260_v1, %v340_v22 }
  0x81   : > { %568 = vst [vmem:[%s1272_s29 + $0x250] sm:$0xff] %v440_v26  ;;  %v342_v26 = vld [vmem:[%s1248_s8 + $0x360] sm:$0xff]  ;;  %v473_v29 = vmul.f32 %v1260_v1, %v341_v24 }
  0x82   : > { %569 = vst [vmem:[%s1272_s29 + $0x258] sm:$0xff] %v441_v28  ;;  %v343_v28 = vld [vmem:[%s1248_s8 + $0x368] sm:$0xff]  ;;  %v474_v31 = vmul.f32 %v1260_v1, %v342_v26 }
  0x83   : > { %570 = vst [vmem:[%s1272_s29 + $0x260] sm:$0xff] %v442_v30  ;;  %v344_v30 = vld [vmem:[%s1248_s8 + $0x370] sm:$0xff]  ;;  %v475_v33 = vmul.f32 %v1260_v1, %v343_v28 }
  0x84   : > { %571 = vst [vmem:[%s1272_s29 + $0x268] sm:$0xff] %v443_v32  ;;  %v345_v32 = vld [vmem:[%s1248_s8 + $0x378] sm:$0xff]  ;;  %v476_v35 = vmul.f32 %v1260_v1, %v344_v30 }
  0x85   : > { %572 = vst [vmem:[%s1272_s29 + $0x270] sm:$0xff] %v444_v34  ;;  %v346_v34 = vld [vmem:[%s1248_s8 + $0x380] sm:$0xff]  ;;  %v477_v37 = vmul.f32 %v1260_v1, %v345_v32 }
  0x86   : > { %573 = vst [vmem:[%s1272_s29 + $0x278] sm:$0xff] %v445_v36  ;;  %v347_v36 = vld [vmem:[%s1248_s8 + $0x388] sm:$0xff]  ;;  %v478_v39 = vmul.f32 %v1260_v1, %v346_v34 }
  0x87   : > { %574 = vst [vmem:[%s1272_s29 + $0x280] sm:$0xff] %v446_v38  ;;  %v348_v38 = vld [vmem:[%s1248_s8 + $0x390] sm:$0xff]  ;;  %v479_v41 = vmul.f32 %v1260_v1, %v347_v36 }
  0x88   : > { %575 = vst [vmem:[%s1272_s29 + $0x288] sm:$0xff] %v447_v40  ;;  %v349_v40 = vld [vmem:[%s1248_s8 + $0x398] sm:$0xff]  ;;  %v480_v43 = vmul.f32 %v1260_v1, %v348_v38 }
  0x89   : > { %576 = vst [vmem:[%s1272_s29 + $0x290] sm:$0xff] %v448_v42  ;;  %v350_v42 = vld [vmem:[%s1248_s8 + $0x3a0] sm:$0xff]  ;;  %v481_v45 = vmul.f32 %v1260_v1, %v349_v40 }
  0x8a   : > { %577 = vst [vmem:[%s1272_s29 + $0x298] sm:$0xff] %v449_v44  ;;  %v351_v44 = vld [vmem:[%s1248_s8 + $0x3a8] sm:$0xff]  ;;  %v482_v47 = vmul.f32 %v1260_v1, %v350_v42 }
  0x8b   : > { %578 = vst [vmem:[%s1272_s29 + $0x2a0] sm:$0xff] %v450_v46  ;;  %v352_v46 = vld [vmem:[%s1248_s8 + $0x3b0] sm:$0xff]  ;;  %v483_v49 = vmul.f32 %v1260_v1, %v351_v44 }
  0x8c   : > { %579 = vst [vmem:[%s1272_s29 + $0x2a8] sm:$0xff] %v451_v48  ;;  %v353_v48 = vld [vmem:[%s1248_s8 + $0x3b8] sm:$0xff]  ;;  %v484_v51 = vmul.f32 %v1260_v1, %v352_v46 }
  0x8d   : > { %580 = vst [vmem:[%s1272_s29 + $0x2b0] sm:$0xff] %v452_v50  ;;  %v354_v50 = vld [vmem:[%s1248_s8 + $0x3c0] sm:$0xff]  ;;  %v485_v53 = vmul.f32 %v1260_v1, %v353_v48 }
  0x8e   : > { %581 = vst [vmem:[%s1272_s29 + $0x2b8] sm:$0xff] %v453_v52  ;;  %v355_v52 = vld [vmem:[%s1248_s8 + $0x3c8] sm:$0xff]  ;;  %v486_v55 = vmul.f32 %v1260_v1, %v354_v50 }
  0x8f   : > { %582 = vst [vmem:[%s1272_s29 + $0x2c0] sm:$0xff] %v454_v54  ;;  %v356_v54 = vld [vmem:[%s1248_s8 + $0x3d0] sm:$0xff]  ;;  %v487_v57 = vmul.f32 %v1260_v1, %v355_v52 }
  0x90   : > { %583 = vst [vmem:[%s1272_s29 + $0x2c8] sm:$0xff] %v455_v56  ;;  %v357_v56 = vld [vmem:[%s1248_s8 + $0x3d8] sm:$0xff]  ;;  %v488_v59 = vmul.f32 %v1260_v1, %v356_v54 }
  0x91   : > { %584 = vst [vmem:[%s1272_s29 + $0x2d0] sm:$0xff] %v456_v58  ;;  %v358_v58 = vld [vmem:[%s1248_s8 + $0x3e0] sm:$0xff]  ;;  %v489_v61 = vmul.f32 %v1260_v1, %v357_v56 }
  0x92   : > { %585 = vst [vmem:[%s1272_s29 + $0x2d8] sm:$0xff] %v457_v60  ;;  %v359_v60 = vld [vmem:[%s1248_s8 + $0x3e8] sm:$0xff]  ;;  %v490_v63 = vmul.f32 %v1260_v1, %v358_v58 }
  0x93   : > { %586 = vst [vmem:[%s1272_s29 + $0x2e0] sm:$0xff] %v458_v62  ;;  %v360_v62 = vld [vmem:[%s1248_s8 + $0x3f0] sm:$0xff]  ;;  %v491_v2 = vmul.f32 %v1260_v1, %v359_v60 }
  0x94   : > { %587 = vst [vmem:[%s1272_s29 + $0x2e8] sm:$0xff] %v459_v0  ;;  %v361_v0 = vld [vmem:[%s1248_s8 + $0x3f8] sm:$0xff]  ;;  %s959_s8 = sshra.s32 %s641_s22, 4  ;;  %s960_s8 = int_to_ptr.hbm [resolvable:$true] %s959_s8 }
  0x95   : > { %588 = vst [vmem:[%s1272_s29 + $0x2f0] sm:$0xff] %v460_v3  ;;  %v492_v3 = vmul.f32 %v1260_v1, %v360_v62  ;;  %v493_v4 = vmul.f32 %v1260_v1, %v361_v0  ;;  %s961_s6 = scalar_lea.hbm %s960_s8, 1024  ;;  %p966_p3 = scmp.lt.s32.totalorder %s960_s8, %s1703_s2 }
  0x96   : > { %589 = vst [vmem:[%s1272_s29 + $0x2f8] sm:$0xff] %v461_v5  ;;  %p962_p1 = scmp.ne.s32.totalorder %s960_s8, %s961_s6  ;;  %p967_p5 = scmp.lt.s32.totalorder %s965_s7, %s961_s6 }
  0x97   : > { %590 = vst [vmem:[%s1272_s29 + $0x300] sm:$0xff] %v462_v7 }
  0x98   : > { %591 = vst [vmem:[%s1272_s29 + $0x308] sm:$0xff] %v463_v9  ;;  %p963_p13 = pnand %p962_p1, %p1231_p8  ;;  %p968_p6 = por %p967_p5, %p966_p3 }
  0x99   : > { %592 = vst [vmem:[%s1272_s29 + $0x310] sm:$0xff] %v464_v11 }
  0x9a   : > { %593 = vst [vmem:[%s1272_s29 + $0x318] sm:$0xff] %v465_v13  ;;  %p964_p0 = pneg %p963_p13 }
  0x9b   : > { %594 = vst [vmem:[%s1272_s29 + $0x320] sm:$0xff] %v466_v15 }
  0x9c   : > { %595 = vst [vmem:[%s1272_s29 + $0x328] sm:$0xff] %v467_v17  ;;  %p969_p9 = pnand %p968_p6, %p964_p0 }
  0x9d   : > { %596 = vst [vmem:[%s1272_s29 + $0x330] sm:$0xff] %v468_v19 }
  0x9e   : > { %597 = vst [vmem:[%s1272_s29 + $0x338] sm:$0xff] %v469_v21 }
  0x9f   : > { %598 = vst [vmem:[%s1272_s29 + $0x340] sm:$0xff] %v470_v23 }
  0xa0   : > { %599 = vst [vmem:[%s1272_s29 + $0x348] sm:$0xff] %v471_v25 }
  0xa1   : > { %600 = vst [vmem:[%s1272_s29 + $0x350] sm:$0xff] %v472_v27 }
  0xa2   : > { %601 = vst [vmem:[%s1272_s29 + $0x358] sm:$0xff] %v473_v29 }
  0xa3   : > { %602 = vst [vmem:[%s1272_s29 + $0x360] sm:$0xff] %v474_v31 }
  0xa4   : > { %603 = vst [vmem:[%s1272_s29 + $0x368] sm:$0xff] %v475_v33 }
  0xa5   : > { %604 = vst [vmem:[%s1272_s29 + $0x370] sm:$0xff] %v476_v35 }
  0xa6   : > { %605 = vst [vmem:[%s1272_s29 + $0x378] sm:$0xff] %v477_v37 }
  0xa7   : > { %606 = vst [vmem:[%s1272_s29 + $0x380] sm:$0xff] %v478_v39 }
  0xa8   : > { %607 = vst [vmem:[%s1272_s29 + $0x388] sm:$0xff] %v479_v41 }
  0xa9   : > { %608 = vst [vmem:[%s1272_s29 + $0x390] sm:$0xff] %v480_v43 }
  0xaa   : > { %609 = vst [vmem:[%s1272_s29 + $0x398] sm:$0xff] %v481_v45 }
  0xab   : > { %610 = vst [vmem:[%s1272_s29 + $0x3a0] sm:$0xff] %v482_v47 }
  0xac   : > { %611 = vst [vmem:[%s1272_s29 + $0x3a8] sm:$0xff] %v483_v49 }
  0xad   : > { %612 = vst [vmem:[%s1272_s29 + $0x3b0] sm:$0xff] %v484_v51 }
  0xae   : > { %613 = vst [vmem:[%s1272_s29 + $0x3b8] sm:$0xff] %v485_v53 }
  0xaf   : > { %614 = vst [vmem:[%s1272_s29 + $0x3c0] sm:$0xff] %v486_v55 }
  0xb0   : > { %615 = vst [vmem:[%s1272_s29 + $0x3c8] sm:$0xff] %v487_v57 }
  0xb1   : > { %616 = vst [vmem:[%s1272_s29 + $0x3d0] sm:$0xff] %v488_v59 }
  0xb2   : > { %617 = vst [vmem:[%s1272_s29 + $0x3d8] sm:$0xff] %v489_v61 }
  0xb3   : > { %618 = vst [vmem:[%s1272_s29 + $0x3e0] sm:$0xff] %v490_v63 }
  0xb4   : > { %619 = vst [vmem:[%s1272_s29 + $0x3e8] sm:$0xff] %v491_v2 }
  0xb5   : > { %620 = vst [vmem:[%s1272_s29 + $0x3f0] sm:$0xff] %v492_v3 }
  0xb6   : > { %621 = vst [vmem:[%s1272_s29 + $0x3f8] sm:$0xff] %v493_v4 }
  0xb7   : > { %972 = shalt.err (!%p969_p9)
}
  0xb8   : > { %s1075_s3 = smov 128   ;;  %s1076_s29 = smov 8  }
  0xb9   : > { %777 = dma.vmem_to_hbm [thread:$0]  (%p1231_p8), %s639_s30, 16384, %s641_s22, %s623_s25, %s1075_s3, %s1075_s3, %s1076_s29  }
  0xba PF: > { %p791_p10 = scmp.ge.s32.totalorder %s1071_s19, 2  ;;  %s655_s16 = sand.u32 1, %s1043_s12  }
  0xbb   : > { %s656_s23 = scalar_lea.sflag [#allocation4], %s655_s16 }
  0xbc   : > { %p787_p11 = pnand %p791_p10, %p1175_p7 }
  0xbe   : > { %p788_p12 = pneg %p787_p11 }
  0xc0   : > { %1026 = dma.done.wait (%p788_p12), %s656_s23, 16384  }
  0xc1   : > { %1028 = vsyncadd (%p788_p12), %s656_s23, 4294950912  ;;  %s21_s19 = sadd.s32 1, %s1071_s19   ;;  %s1716_s27 = sld [smem:[#allocation11_spill]] }
  0xc2   : > { %p18_p2 = scmp.ge.s32.totalorder %s21_s19, 6   ;;  %s1717_s28 = sld [smem:[#allocation12_spill]] }
  0xc3   : > { %s1718_s9 = smov %s1035_s10  ;;  %s1719_s10 = smov %s1039_s11 }
  0xc4   : > { %s1720_s11 = smov %s1208_s5  ;;  %s1721_s12 = smov %s1047_s13 }
  0xc5   : > { %s1722_s13 = smov %s1051_s14  ;;  %s1723_s14 = smov %s1188_s4 }
  0xc6   : > { %s1724_s15 = smov %s1063_s17  ;;  %s1725_s16 = smov %s1067_s18 }
  0xc7   : > { %s1726_s17 = smov %s1716_s27  ;;  %20 = sbr.rel (!%p18_p2) target bundleno = 11 (0xb), region = 86 }
  0xc8   : > { %s1727_s18 = smov %s1717_s28 }
  0xcc   :  { %662 = vsyncpa [#allocation3], 1 }
  0xcd   :  { %664 = vsyncpa [#allocation3 + $0x1], 1 }
  0xce   :  { %665 = vsyncpa [#allocation6], 1 }
  0xcf   :  { %667 = vsyncpa [#allocation6 + $0x1], 1 }
  0xd0   :  { %668 = vsyncpa [#allocation4], 1 }
  0xd1   :  { %670 = vsyncpa [#allocation4 + $0x1], 1 }

</bundles_post_ra>
